<compile_context>
chip_gen: v6e
topology: v6e:2x2x1
jax: 0.10.0
libtpu: 0.0.40
codegen_flags: <defaults>
</compile_context>

<pallas_src>
import jax
import jax.numpy as jnp
from jax.experimental import pallas as pl
from jax.experimental.pallas import tpu as pltpu

# efficient-kan defaults
GRID_SIZE = 5
SPLINE_ORDER = 3
N_COEFF = GRID_SIZE + SPLINE_ORDER              # 8 cubic basis functions / coeffs
N_KNOTS = GRID_SIZE + 2 * SPLINE_ORDER + 1      # 12 knots -> 11 half-open cells
GRID_RANGE = (-1.0, 1.0)

IN_FEATURES = 128
HIDDEN = 32

# Uniform extended knot grid as compile-time constants.
H_KNOT = (GRID_RANGE[1] - GRID_RANGE[0]) / GRID_SIZE          # 0.4
INV_H = 1.0 / H_KNOT                                          # 2.5
GRID_LO_EXT = GRID_RANGE[0] - SPLINE_ORDER * H_KNOT           # t_0 = -2.2


def _round_up(x, m):
    return ((x + m - 1) // m) * m


# ---------------------------------------------------------------------------
# In-kernel KAN features: [silu(x) | cubic B-spline bases], one lane-dense slab
# ---------------------------------------------------------------------------
def _kan_features(x):
    """x: (B, in) f32  ->  (B, (1 + N_COEFF) * in) f32.

    Closed-form uniform cubic B-spline basis via local support: for x in knot
    cell j (j = 0..10), only bases B_{j-3}..B_j are nonzero and their values are
    the standard uniform cubic weights b0..b3(u) with u the in-cell offset.
    Slots outside 0..7 are dropped, exactly matching the truncated Cox-de Boor
    recursion of efficient-kan.  Outside [t_0, t_11) all bases are zero.
    """
    # base-path activation (sigmoid on EUP, mul on VPU)
    silu_x = x * jax.nn.sigmoid(x)

    # cell coordinate / index / fractional offset
    s = (x - GRID_LO_EXT) * INV_H          # s in [0, 11) on the support
    jf = jnp.floor(s)                      # cell index as float (exact small ints)
    u = s - jf                             # in-cell offset, u in [0, 1)

    u2 = u * u
    u3 = u2 * u
    v = 1.0 - u
    sixth = 1.0 / 6.0
    b3 = u3 * sixth                                  # weight of B_j
    b2 = (3.0 * (u + u2 - u3) + 1.0) * sixth         # weight of B_{j-1}
    b1 = (3.0 * u3 - 6.0 * u2 + 4.0) * sixth         # weight of B_{j-2}
    b0 = v * v * v * sixth                           # weight of B_{j-3}

    # 11 shared cell-membership masks (out-of-range x matches none -> zero bases)
    cells = [jf == float(c) for c in range(N_KNOTS - 1)]
    zero = jnp.zeros_like(u)

    bases = []
    for i in range(N_COEFF):               # basis B_i has support over cells i..i+3
        bi = (jnp.where(cells[i], b3, zero)
              + jnp.where(cells[i + 1], b2, zero)
              + jnp.where(cells[i + 2], b1, zero)
              + jnp.where(cells[i + 3], b0, zero))
        bases.append(bi)

    # single lane-dense feature slab, order: [silu | coeff 0 | ... | coeff 7]
    return jnp.concatenate([silu_x] + bases, axis=-1)


def selector_kernel(x_ref, w1_ref, w2_ref, o_ref):
    f32 = jnp.float32
    # layer 1: (TB, 9*128) @ (9*128, 32)   -- base + spline fused in one MXU dot
    h = jnp.dot(_kan_features(x_ref[...]), w1_ref[...], preferred_element_type=f32)
    # layer 2: (TB, 9*32) @ (9*32, out_pad)
    y = jnp.dot(_kan_features(h), w2_ref[...], preferred_element_type=f32)
    o_ref[...] = y.astype(o_ref.dtype)


# ---------------------------------------------------------------------------
# Parameter construction (deterministic, shapes from efficient-kan KANLinear)
# ---------------------------------------------------------------------------
def make_kan_linear_params(key, in_features, out_features):
    k1, k2, k3 = jax.random.split(key, 3)
    h = (GRID_RANGE[1] - GRID_RANGE[0]) / GRID_SIZE
    grid_1d = (jnp.arange(-SPLINE_ORDER, GRID_SIZE + SPLINE_ORDER + 1,
                          dtype=jnp.float32) * h + GRID_RANGE[0])
    grid = jnp.broadcast_to(grid_1d, (in_features, N_KNOTS))      # (in, 12)
    base_weight = jax.random.normal(k1, (out_features, in_features),
                                    jnp.float32) * 0.1
    spline_weight = jax.random.normal(k2, (out_features, in_features, N_COEFF),
                                      jnp.float32) * 0.1
    spline_scaler = jax.random.normal(k3, (out_features, in_features),
                                      jnp.float32) * 0.1 + 1.0
    return dict(grid=grid, base_weight=base_weight,
                spline_weight=spline_weight, spline_scaler=spline_scaler)


def make_selector_params(key, num_task):
    k1, k2 = jax.random.split(key)
    return [make_kan_linear_params(k1, IN_FEATURES, HIDDEN),
            make_kan_linear_params(k2, HIDDEN, num_task)]


def _layer_kernel_weight(p, out_pad=None):
    """Host-side weight prep: stacked ((1+coeff)*in, out) matrix matching the
    in-kernel feature order [silu(x) | basis 0 | ... | basis 7]."""
    out_f, in_f = p["base_weight"].shape
    scaled = p["spline_weight"] * p["spline_scaler"][..., None]   # (out, in, coeff)
    w_base_t = p["base_weight"].T                                 # (in, out)
    w_spline = jnp.transpose(scaled, (2, 1, 0)).reshape(N_COEFF * in_f, out_f)
    w = jnp.concatenate([w_base_t, w_spline], axis=0)             # (9*in, out)
    if out_pad is not None and out_pad > out_f:
        w = jnp.pad(w, ((0, 0), (0, out_pad - out_f)))
    return w


# ---------------------------------------------------------------------------
# Wrapper: flatten (like x.view(x.size(0), -1)) + batch-tiled pallas_call
# ---------------------------------------------------------------------------
def selector_net_forward(x, params, num_task, tb_max=512):
    B = x.shape[0]
    x2 = x.reshape(B, -1).astype(jnp.float32)                     # flatten if >2D
    assert x2.shape[1] == IN_FEATURES
    tb_max = _round_up(tb_max, 8)

    # lane-dense padded output width (avoids masked partial stores)
    out_pad = _round_up(max(num_task, 1), 128)

    w1 = _layer_kernel_weight(params[0])                          # (1152, 32)
    w2 = _layer_kernel_weight(params[1], out_pad=out_pad)         # (288, out_pad)

    # batch tile: sublane-aligned, balanced split; >=2 grid steps for medium/large
    # batches so the "parallel" axis can shard across v7x's two TensorCores.
    if B > tb_max:
        n = pl.cdiv(B, tb_max)
        TB = _round_up(pl.cdiv(B, n), 8)
    elif B >= 256:
        TB = _round_up(pl.cdiv(B, 2), 8)
    else:
        TB = _round_up(B, 8)
    n_steps = pl.cdiv(B, TB)
    Bp = n_steps * TB
    if Bp != B:
        x2 = jnp.pad(x2, ((0, Bp - B), (0, 0)))

    pinned = lambda i: (0, 0)
    out = pl.pallas_call(
        selector_kernel,
        out_shape=jax.ShapeDtypeStruct((Bp, out_pad), jnp.float32),
        grid=(n_steps,),
        in_specs=[
            pl.BlockSpec((TB, IN_FEATURES), lambda i: (i, 0)),    # activations, tiled
            pl.BlockSpec(w1.shape, pinned),                       # stacked weights
            pl.BlockSpec(w2.shape, pinned),                       # pinned (constant map)
        ],
        out_specs=pl.BlockSpec((TB, out_pad), lambda i: (i, 0)),
        compiler_params=pltpu.CompilerParams(
            dimension_semantics=("parallel",)),
    )(x2, w1, w2)
    return out[:B, :num_task]


# ---------------------------------------------------------------------------
# Pure-JAX reference (verbatim efficient-kan math) for validation
# ---------------------------------------------------------------------------
def kan_linear_ref(x, p):
    grid = p["grid"]
    base = jax.nn.silu(x) @ p["base_weight"].T
    xe = x[:, :, None]
    g = grid[None]
    bases = ((xe >= g[:, :, :-1]) & (xe < g[:, :, 1:])).astype(x.dtype)
    for k in range(1, SPLINE_ORDER + 1):
        bases = ((xe - g[:, :, : -(k + 1)]) / (g[:, :, k:-1] - g[:, :, : -(k + 1)])
                 * bases[:, :, :-1]
                 + (g[:, :, k + 1:] - xe) / (g[:, :, k + 1:] - g[:, :, 1:-k])
                 * bases[:, :, 1:])
    scaled = p["spline_weight"] * p["spline_scaler"][..., None]
    spline = bases.reshape(x.shape[0], -1) @ scaled.reshape(scaled.shape[0], -1).T
    return base + spline


def selector_net_ref(x, params):
    h = x.reshape(x.shape[0], -1).astype(jnp.float32)
    for p in params:
        h = kan_linear_ref(h, p)
    return h


if __name__ == "__main__":
    num_task = 10
    key = jax.random.PRNGKey(0)
    kx, kp = jax.random.split(key)

    # Input with >2 dims -> module flattens it to (B, 128)
    x = jax.random.normal(kx, (2, 8, 4, 4), jnp.float32) * 0.5
    params = make_selector_params(kp, num_task)

    out = selector_net_forward(x, params, num_task)
    out = jax.block_until_ready(out)

    ref = selector_net_ref(x, params)
    assert out.shape == (2, num_task)
    assert jnp.allclose(out, ref, rtol=1e-4, atol=1e-4), \
        f"max abs err = {jnp.max(jnp.abs(out - ref))}"
    print("KERNEL_OK")
</pallas_src>

<mosaic_0001>
module attributes {stable_mosaic.version = 11 : i64} {
  func.func @selector_kernel(%arg0: i32, %arg1: memref<8x128xf32, #tpu.memory_space<vmem>>, %arg2: memref<1152x32xf32, #tpu.memory_space<vmem>>, %arg3: memref<288x128xf32, #tpu.memory_space<vmem>>, %arg4: memref<8x128xf32, #tpu.memory_space<vmem>>) attributes {dimension_semantics = [#tpu.dimension_semantics<parallel>], iteration_bounds = array<i64: 1>, scalar_prefetch = 0 : i64, scratch_operands = 0 : i64, tpu.core_type = #tpu.core_type<tc>, window_params = [{transform_indices = @transform_0, window_bounds = array<i64: 8, 128>}, {pipeline_mode = #tpu.pipeline_mode<synchronous>, transform_indices = @transform_1, window_bounds = array<i64: 1152, 32>}, {pipeline_mode = #tpu.pipeline_mode<synchronous>, transform_indices = @transform_2, window_bounds = array<i64: 288, 128>}, {transform_indices = @transform_3, window_bounds = array<i64: 8, 128>}]} {
    %c0 = arith.constant 0 : index
    %c0_0 = arith.constant 0 : index
    %0 = vector.load %arg1[%c0, %c0_0] : memref<8x128xf32, #tpu.memory_space<vmem>>, vector<8x128xf32>
    %1 = arith.negf %0 : vector<8x128xf32>
    %2 = math.exp %1 : vector<8x128xf32>
    %cst = arith.constant 1.000000e+00 : f32
    %3 = vector.broadcast %cst : f32 to vector<8x128xf32>
    %4 = arith.addf %3, %2 : vector<8x128xf32>
    %5 = arith.divf %3, %4 : vector<8x128xf32>
    %6 = arith.mulf %0, %5 : vector<8x128xf32>
    %cst_1 = arith.constant -2.200000e+00 : f32
    %7 = vector.broadcast %cst_1 : f32 to vector<8x128xf32>
    %8 = arith.subf %0, %7 : vector<8x128xf32>
    %cst_2 = arith.constant 2.500000e+00 : f32
    %9 = vector.broadcast %cst_2 : f32 to vector<8x128xf32>
    %10 = arith.mulf %8, %9 : vector<8x128xf32>
    %11 = math.floor %10 : vector<8x128xf32>
    %12 = arith.subf %10, %11 : vector<8x128xf32>
    %13 = arith.mulf %12, %12 : vector<8x128xf32>
    %14 = arith.mulf %13, %12 : vector<8x128xf32>
    %cst_3 = arith.constant 1.000000e+00 : f32
    %15 = vector.broadcast %cst_3 : f32 to vector<8x128xf32>
    %16 = arith.subf %15, %12 : vector<8x128xf32>
    %cst_4 = arith.constant 0.166666672 : f32
    %17 = vector.broadcast %cst_4 : f32 to vector<8x128xf32>
    %18 = arith.mulf %14, %17 : vector<8x128xf32>
    %19 = arith.addf %12, %13 : vector<8x128xf32>
    %20 = arith.subf %19, %14 : vector<8x128xf32>
    %cst_5 = arith.constant 3.000000e+00 : f32
    %21 = vector.broadcast %cst_5 : f32 to vector<8x128xf32>
    %22 = arith.mulf %21, %20 : vector<8x128xf32>
    %cst_6 = arith.constant 1.000000e+00 : f32
    %23 = vector.broadcast %cst_6 : f32 to vector<8x128xf32>
    %24 = arith.addf %22, %23 : vector<8x128xf32>
    %cst_7 = arith.constant 0.166666672 : f32
    %25 = vector.broadcast %cst_7 : f32 to vector<8x128xf32>
    %26 = arith.mulf %24, %25 : vector<8x128xf32>
    %cst_8 = arith.constant 3.000000e+00 : f32
    %27 = vector.broadcast %cst_8 : f32 to vector<8x128xf32>
    %28 = arith.mulf %27, %14 : vector<8x128xf32>
    %cst_9 = arith.constant 6.000000e+00 : f32
    %29 = vector.broadcast %cst_9 : f32 to vector<8x128xf32>
    %30 = arith.mulf %29, %13 : vector<8x128xf32>
    %31 = arith.subf %28, %30 : vector<8x128xf32>
    %cst_10 = arith.constant 4.000000e+00 : f32
    %32 = vector.broadcast %cst_10 : f32 to vector<8x128xf32>
    %33 = arith.addf %31, %32 : vector<8x128xf32>
    %cst_11 = arith.constant 0.166666672 : f32
    %34 = vector.broadcast %cst_11 : f32 to vector<8x128xf32>
    %35 = arith.mulf %33, %34 : vector<8x128xf32>
    %36 = arith.mulf %16, %16 : vector<8x128xf32>
    %37 = arith.mulf %36, %16 : vector<8x128xf32>
    %cst_12 = arith.constant 0.166666672 : f32
    %38 = vector.broadcast %cst_12 : f32 to vector<8x128xf32>
    %39 = arith.mulf %37, %38 : vector<8x128xf32>
    %cst_13 = arith.constant 0.000000e+00 : f32
    %40 = vector.broadcast %cst_13 : f32 to vector<8x128xf32>
    %41 = arith.cmpf oeq, %11, %40 : vector<8x128xf32>
    %cst_14 = arith.constant 1.000000e+00 : f32
    %42 = vector.broadcast %cst_14 : f32 to vector<8x128xf32>
    %43 = arith.cmpf oeq, %11, %42 : vector<8x128xf32>
    %cst_15 = arith.constant 2.000000e+00 : f32
    %44 = vector.broadcast %cst_15 : f32 to vector<8x128xf32>
    %45 = arith.cmpf oeq, %11, %44 : vector<8x128xf32>
    %cst_16 = arith.constant 3.000000e+00 : f32
    %46 = vector.broadcast %cst_16 : f32 to vector<8x128xf32>
    %47 = arith.cmpf oeq, %11, %46 : vector<8x128xf32>
    %cst_17 = arith.constant 4.000000e+00 : f32
    %48 = vector.broadcast %cst_17 : f32 to vector<8x128xf32>
    %49 = arith.cmpf oeq, %11, %48 : vector<8x128xf32>
    %cst_18 = arith.constant 5.000000e+00 : f32
    %50 = vector.broadcast %cst_18 : f32 to vector<8x128xf32>
    %51 = arith.cmpf oeq, %11, %50 : vector<8x128xf32>
    %cst_19 = arith.constant 6.000000e+00 : f32
    %52 = vector.broadcast %cst_19 : f32 to vector<8x128xf32>
    %53 = arith.cmpf oeq, %11, %52 : vector<8x128xf32>
    %cst_20 = arith.constant 7.000000e+00 : f32
    %54 = vector.broadcast %cst_20 : f32 to vector<8x128xf32>
    %55 = arith.cmpf oeq, %11, %54 : vector<8x128xf32>
    %cst_21 = arith.constant 8.000000e+00 : f32
    %56 = vector.broadcast %cst_21 : f32 to vector<8x128xf32>
    %57 = arith.cmpf oeq, %11, %56 : vector<8x128xf32>
    %cst_22 = arith.constant 9.000000e+00 : f32
    %58 = vector.broadcast %cst_22 : f32 to vector<8x128xf32>
    %59 = arith.cmpf oeq, %11, %58 : vector<8x128xf32>
    %cst_23 = arith.constant 1.000000e+01 : f32
    %60 = vector.broadcast %cst_23 : f32 to vector<8x128xf32>
    %61 = arith.cmpf oeq, %11, %60 : vector<8x128xf32>
    %cst_24 = arith.constant 0.000000e+00 : f32
    %62 = vector.broadcast %cst_24 : f32 to vector<8x128xf32>
    %63 = arith.select %41, %18, %62 : vector<8x128xi1>, vector<8x128xf32>
    %64 = arith.select %43, %26, %62 : vector<8x128xi1>, vector<8x128xf32>
    %65 = arith.addf %63, %64 : vector<8x128xf32>
    %66 = arith.select %45, %35, %62 : vector<8x128xi1>, vector<8x128xf32>
    %67 = arith.addf %65, %66 : vector<8x128xf32>
    %68 = arith.select %47, %39, %62 : vector<8x128xi1>, vector<8x128xf32>
    %69 = arith.addf %67, %68 : vector<8x128xf32>
    %70 = arith.select %43, %18, %62 : vector<8x128xi1>, vector<8x128xf32>
    %71 = arith.select %45, %26, %62 : vector<8x128xi1>, vector<8x128xf32>
    %72 = arith.addf %70, %71 : vector<8x128xf32>
    %73 = arith.select %47, %35, %62 : vector<8x128xi1>, vector<8x128xf32>
    %74 = arith.addf %72, %73 : vector<8x128xf32>
    %75 = arith.select %49, %39, %62 : vector<8x128xi1>, vector<8x128xf32>
    %76 = arith.addf %74, %75 : vector<8x128xf32>
    %77 = arith.select %45, %18, %62 : vector<8x128xi1>, vector<8x128xf32>
    %78 = arith.select %47, %26, %62 : vector<8x128xi1>, vector<8x128xf32>
    %79 = arith.addf %77, %78 : vector<8x128xf32>
    %80 = arith.select %49, %35, %62 : vector<8x128xi1>, vector<8x128xf32>
    %81 = arith.addf %79, %80 : vector<8x128xf32>
    %82 = arith.select %51, %39, %62 : vector<8x128xi1>, vector<8x128xf32>
    %83 = arith.addf %81, %82 : vector<8x128xf32>
    %84 = arith.select %47, %18, %62 : vector<8x128xi1>, vector<8x128xf32>
    %85 = arith.select %49, %26, %62 : vector<8x128xi1>, vector<8x128xf32>
    %86 = arith.addf %84, %85 : vector<8x128xf32>
    %87 = arith.select %51, %35, %62 : vector<8x128xi1>, vector<8x128xf32>
    %88 = arith.addf %86, %87 : vector<8x128xf32>
    %89 = arith.select %53, %39, %62 : vector<8x128xi1>, vector<8x128xf32>
    %90 = arith.addf %88, %89 : vector<8x128xf32>
    %91 = arith.select %49, %18, %62 : vector<8x128xi1>, vector<8x128xf32>
    %92 = arith.select %51, %26, %62 : vector<8x128xi1>, vector<8x128xf32>
    %93 = arith.addf %91, %92 : vector<8x128xf32>
    %94 = arith.select %53, %35, %62 : vector<8x128xi1>, vector<8x128xf32>
    %95 = arith.addf %93, %94 : vector<8x128xf32>
    %96 = arith.select %55, %39, %62 : vector<8x128xi1>, vector<8x128xf32>
    %97 = arith.addf %95, %96 : vector<8x128xf32>
    %98 = arith.select %51, %18, %62 : vector<8x128xi1>, vector<8x128xf32>
    %99 = arith.select %53, %26, %62 : vector<8x128xi1>, vector<8x128xf32>
    %100 = arith.addf %98, %99 : vector<8x128xf32>
    %101 = arith.select %55, %35, %62 : vector<8x128xi1>, vector<8x128xf32>
    %102 = arith.addf %100, %101 : vector<8x128xf32>
    %103 = arith.select %57, %39, %62 : vector<8x128xi1>, vector<8x128xf32>
    %104 = arith.addf %102, %103 : vector<8x128xf32>
    %105 = arith.select %53, %18, %62 : vector<8x128xi1>, vector<8x128xf32>
    %106 = arith.select %55, %26, %62 : vector<8x128xi1>, vector<8x128xf32>
    %107 = arith.addf %105, %106 : vector<8x128xf32>
    %108 = arith.select %57, %35, %62 : vector<8x128xi1>, vector<8x128xf32>
    %109 = arith.addf %107, %108 : vector<8x128xf32>
    %110 = arith.select %59, %39, %62 : vector<8x128xi1>, vector<8x128xf32>
    %111 = arith.addf %109, %110 : vector<8x128xf32>
    %112 = arith.select %55, %18, %62 : vector<8x128xi1>, vector<8x128xf32>
    %113 = arith.select %57, %26, %62 : vector<8x128xi1>, vector<8x128xf32>
    %114 = arith.addf %112, %113 : vector<8x128xf32>
    %115 = arith.select %59, %35, %62 : vector<8x128xi1>, vector<8x128xf32>
    %116 = arith.addf %114, %115 : vector<8x128xf32>
    %117 = arith.select %61, %39, %62 : vector<8x128xi1>, vector<8x128xf32>
    %118 = arith.addf %116, %117 : vector<8x128xf32>
    %119 = tpu.concatenate %6, %69, %76, %83, %90, %97, %104, %111, %118 in 1 : vector<8x128xf32>, vector<8x128xf32>, vector<8x128xf32>, vector<8x128xf32>, vector<8x128xf32>, vector<8x128xf32>, vector<8x128xf32>, vector<8x128xf32>, vector<8x128xf32> -> vector<8x1152xf32>
    %c0_25 = arith.constant 0 : index
    %c0_26 = arith.constant 0 : index
    %120 = vector.load %arg2[%c0_25, %c0_26] : memref<1152x32xf32, #tpu.memory_space<vmem>>, vector<1152x32xf32>
    %cst_27 = arith.constant dense<0.000000e+00> : vector<8x32xf32>
    %121 = tpu.matmul %119, %120, %cst_27 {dimension_numbers = #tpu.dot_dimension_numbers<[1], [0], [0], [1], [0, 0, 1, 1], [], []>} : vector<8x1152xf32>, vector<1152x32xf32>, vector<8x32xf32> -> vector<8x32xf32>
    %122 = arith.negf %121 : vector<8x32xf32>
    %123 = math.exp %122 : vector<8x32xf32>
    %cst_28 = arith.constant 1.000000e+00 : f32
    %124 = vector.broadcast %cst_28 : f32 to vector<8x32xf32>
    %125 = arith.addf %124, %123 : vector<8x32xf32>
    %126 = arith.divf %124, %125 : vector<8x32xf32>
    %127 = arith.mulf %121, %126 : vector<8x32xf32>
    %cst_29 = arith.constant -2.200000e+00 : f32
    %128 = vector.broadcast %cst_29 : f32 to vector<8x32xf32>
    %129 = arith.subf %121, %128 : vector<8x32xf32>
    %cst_30 = arith.constant 2.500000e+00 : f32
    %130 = vector.broadcast %cst_30 : f32 to vector<8x32xf32>
    %131 = arith.mulf %129, %130 : vector<8x32xf32>
    %132 = math.floor %131 : vector<8x32xf32>
    %133 = arith.subf %131, %132 : vector<8x32xf32>
    %134 = arith.mulf %133, %133 : vector<8x32xf32>
    %135 = arith.mulf %134, %133 : vector<8x32xf32>
    %cst_31 = arith.constant 1.000000e+00 : f32
    %136 = vector.broadcast %cst_31 : f32 to vector<8x32xf32>
    %137 = arith.subf %136, %133 : vector<8x32xf32>
    %cst_32 = arith.constant 0.166666672 : f32
    %138 = vector.broadcast %cst_32 : f32 to vector<8x32xf32>
    %139 = arith.mulf %135, %138 : vector<8x32xf32>
    %140 = arith.addf %133, %134 : vector<8x32xf32>
    %141 = arith.subf %140, %135 : vector<8x32xf32>
    %cst_33 = arith.constant 3.000000e+00 : f32
    %142 = vector.broadcast %cst_33 : f32 to vector<8x32xf32>
    %143 = arith.mulf %142, %141 : vector<8x32xf32>
    %cst_34 = arith.constant 1.000000e+00 : f32
    %144 = vector.broadcast %cst_34 : f32 to vector<8x32xf32>
    %145 = arith.addf %143, %144 : vector<8x32xf32>
    %cst_35 = arith.constant 0.166666672 : f32
    %146 = vector.broadcast %cst_35 : f32 to vector<8x32xf32>
    %147 = arith.mulf %145, %146 : vector<8x32xf32>
    %cst_36 = arith.constant 3.000000e+00 : f32
    %148 = vector.broadcast %cst_36 : f32 to vector<8x32xf32>
    %149 = arith.mulf %148, %135 : vector<8x32xf32>
    %cst_37 = arith.constant 6.000000e+00 : f32
    %150 = vector.broadcast %cst_37 : f32 to vector<8x32xf32>
    %151 = arith.mulf %150, %134 : vector<8x32xf32>
    %152 = arith.subf %149, %151 : vector<8x32xf32>
    %cst_38 = arith.constant 4.000000e+00 : f32
    %153 = vector.broadcast %cst_38 : f32 to vector<8x32xf32>
    %154 = arith.addf %152, %153 : vector<8x32xf32>
    %cst_39 = arith.constant 0.166666672 : f32
    %155 = vector.broadcast %cst_39 : f32 to vector<8x32xf32>
    %156 = arith.mulf %154, %155 : vector<8x32xf32>
    %157 = arith.mulf %137, %137 : vector<8x32xf32>
    %158 = arith.mulf %157, %137 : vector<8x32xf32>
    %cst_40 = arith.constant 0.166666672 : f32
    %159 = vector.broadcast %cst_40 : f32 to vector<8x32xf32>
    %160 = arith.mulf %158, %159 : vector<8x32xf32>
    %cst_41 = arith.constant 0.000000e+00 : f32
    %161 = vector.broadcast %cst_41 : f32 to vector<8x32xf32>
    %162 = arith.cmpf oeq, %132, %161 : vector<8x32xf32>
    %cst_42 = arith.constant 1.000000e+00 : f32
    %163 = vector.broadcast %cst_42 : f32 to vector<8x32xf32>
    %164 = arith.cmpf oeq, %132, %163 : vector<8x32xf32>
    %cst_43 = arith.constant 2.000000e+00 : f32
    %165 = vector.broadcast %cst_43 : f32 to vector<8x32xf32>
    %166 = arith.cmpf oeq, %132, %165 : vector<8x32xf32>
    %cst_44 = arith.constant 3.000000e+00 : f32
    %167 = vector.broadcast %cst_44 : f32 to vector<8x32xf32>
    %168 = arith.cmpf oeq, %132, %167 : vector<8x32xf32>
    %cst_45 = arith.constant 4.000000e+00 : f32
    %169 = vector.broadcast %cst_45 : f32 to vector<8x32xf32>
    %170 = arith.cmpf oeq, %132, %169 : vector<8x32xf32>
    %cst_46 = arith.constant 5.000000e+00 : f32
    %171 = vector.broadcast %cst_46 : f32 to vector<8x32xf32>
    %172 = arith.cmpf oeq, %132, %171 : vector<8x32xf32>
    %cst_47 = arith.constant 6.000000e+00 : f32
    %173 = vector.broadcast %cst_47 : f32 to vector<8x32xf32>
    %174 = arith.cmpf oeq, %132, %173 : vector<8x32xf32>
    %cst_48 = arith.constant 7.000000e+00 : f32
    %175 = vector.broadcast %cst_48 : f32 to vector<8x32xf32>
    %176 = arith.cmpf oeq, %132, %175 : vector<8x32xf32>
    %cst_49 = arith.constant 8.000000e+00 : f32
    %177 = vector.broadcast %cst_49 : f32 to vector<8x32xf32>
    %178 = arith.cmpf oeq, %132, %177 : vector<8x32xf32>
    %cst_50 = arith.constant 9.000000e+00 : f32
    %179 = vector.broadcast %cst_50 : f32 to vector<8x32xf32>
    %180 = arith.cmpf oeq, %132, %179 : vector<8x32xf32>
    %cst_51 = arith.constant 1.000000e+01 : f32
    %181 = vector.broadcast %cst_51 : f32 to vector<8x32xf32>
    %182 = arith.cmpf oeq, %132, %181 : vector<8x32xf32>
    %cst_52 = arith.constant 0.000000e+00 : f32
    %183 = vector.broadcast %cst_52 : f32 to vector<8x32xf32>
    %184 = arith.select %162, %139, %183 : vector<8x32xi1>, vector<8x32xf32>
    %185 = arith.select %164, %147, %183 : vector<8x32xi1>, vector<8x32xf32>
    %186 = arith.addf %184, %185 : vector<8x32xf32>
    %187 = arith.select %166, %156, %183 : vector<8x32xi1>, vector<8x32xf32>
    %188 = arith.addf %186, %187 : vector<8x32xf32>
    %189 = arith.select %168, %160, %183 : vector<8x32xi1>, vector<8x32xf32>
    %190 = arith.addf %188, %189 : vector<8x32xf32>
    %191 = arith.select %164, %139, %183 : vector<8x32xi1>, vector<8x32xf32>
    %192 = arith.select %166, %147, %183 : vector<8x32xi1>, vector<8x32xf32>
    %193 = arith.addf %191, %192 : vector<8x32xf32>
    %194 = arith.select %168, %156, %183 : vector<8x32xi1>, vector<8x32xf32>
    %195 = arith.addf %193, %194 : vector<8x32xf32>
    %196 = arith.select %170, %160, %183 : vector<8x32xi1>, vector<8x32xf32>
    %197 = arith.addf %195, %196 : vector<8x32xf32>
    %198 = arith.select %166, %139, %183 : vector<8x32xi1>, vector<8x32xf32>
    %199 = arith.select %168, %147, %183 : vector<8x32xi1>, vector<8x32xf32>
    %200 = arith.addf %198, %199 : vector<8x32xf32>
    %201 = arith.select %170, %156, %183 : vector<8x32xi1>, vector<8x32xf32>
    %202 = arith.addf %200, %201 : vector<8x32xf32>
    %203 = arith.select %172, %160, %183 : vector<8x32xi1>, vector<8x32xf32>
    %204 = arith.addf %202, %203 : vector<8x32xf32>
    %205 = arith.select %168, %139, %183 : vector<8x32xi1>, vector<8x32xf32>
    %206 = arith.select %170, %147, %183 : vector<8x32xi1>, vector<8x32xf32>
    %207 = arith.addf %205, %206 : vector<8x32xf32>
    %208 = arith.select %172, %156, %183 : vector<8x32xi1>, vector<8x32xf32>
    %209 = arith.addf %207, %208 : vector<8x32xf32>
    %210 = arith.select %174, %160, %183 : vector<8x32xi1>, vector<8x32xf32>
    %211 = arith.addf %209, %210 : vector<8x32xf32>
    %212 = arith.select %170, %139, %183 : vector<8x32xi1>, vector<8x32xf32>
    %213 = arith.select %172, %147, %183 : vector<8x32xi1>, vector<8x32xf32>
    %214 = arith.addf %212, %213 : vector<8x32xf32>
    %215 = arith.select %174, %156, %183 : vector<8x32xi1>, vector<8x32xf32>
    %216 = arith.addf %214, %215 : vector<8x32xf32>
    %217 = arith.select %176, %160, %183 : vector<8x32xi1>, vector<8x32xf32>
    %218 = arith.addf %216, %217 : vector<8x32xf32>
    %219 = arith.select %172, %139, %183 : vector<8x32xi1>, vector<8x32xf32>
    %220 = arith.select %174, %147, %183 : vector<8x32xi1>, vector<8x32xf32>
    %221 = arith.addf %219, %220 : vector<8x32xf32>
    %222 = arith.select %176, %156, %183 : vector<8x32xi1>, vector<8x32xf32>
    %223 = arith.addf %221, %222 : vector<8x32xf32>
    %224 = arith.select %178, %160, %183 : vector<8x32xi1>, vector<8x32xf32>
    %225 = arith.addf %223, %224 : vector<8x32xf32>
    %226 = arith.select %174, %139, %183 : vector<8x32xi1>, vector<8x32xf32>
    %227 = arith.select %176, %147, %183 : vector<8x32xi1>, vector<8x32xf32>
    %228 = arith.addf %226, %227 : vector<8x32xf32>
    %229 = arith.select %178, %156, %183 : vector<8x32xi1>, vector<8x32xf32>
    %230 = arith.addf %228, %229 : vector<8x32xf32>
    %231 = arith.select %180, %160, %183 : vector<8x32xi1>, vector<8x32xf32>
    %232 = arith.addf %230, %231 : vector<8x32xf32>
    %233 = arith.select %176, %139, %183 : vector<8x32xi1>, vector<8x32xf32>
    %234 = arith.select %178, %147, %183 : vector<8x32xi1>, vector<8x32xf32>
    %235 = arith.addf %233, %234 : vector<8x32xf32>
    %236 = arith.select %180, %156, %183 : vector<8x32xi1>, vector<8x32xf32>
    %237 = arith.addf %235, %236 : vector<8x32xf32>
    %238 = arith.select %182, %160, %183 : vector<8x32xi1>, vector<8x32xf32>
    %239 = arith.addf %237, %238 : vector<8x32xf32>
    %240 = tpu.concatenate %127, %190, %197, %204, %211, %218, %225, %232, %239 in 1 : vector<8x32xf32>, vector<8x32xf32>, vector<8x32xf32>, vector<8x32xf32>, vector<8x32xf32>, vector<8x32xf32>, vector<8x32xf32>, vector<8x32xf32>, vector<8x32xf32> -> vector<8x288xf32>
    %c0_53 = arith.constant 0 : index
    %c0_54 = arith.constant 0 : index
    %241 = vector.load %arg3[%c0_53, %c0_54] : memref<288x128xf32, #tpu.memory_space<vmem>>, vector<288x128xf32>
    %cst_55 = arith.constant dense<0.000000e+00> : vector<8x128xf32>
    %242 = tpu.matmul %240, %241, %cst_55 {dimension_numbers = #tpu.dot_dimension_numbers<[1], [0], [0], [1], [0, 0, 1, 1], [], []>} : vector<8x288xf32>, vector<288x128xf32>, vector<8x128xf32> -> vector<8x128xf32>
    %c0_56 = arith.constant 0 : index
    %c0_57 = arith.constant 0 : index
    %243 = vector.load %arg4[%c0_56, %c0_57] : memref<8x128xf32, #tpu.memory_space<vmem>>, vector<8x128xf32>
    tpu.vector_store %arg4[%c0_56, %c0_57], %242 {strides = array<i32>} : memref<8x128xf32, #tpu.memory_space<vmem>>, vector<8x128xf32>,
    return
  }
  func.func @transform_0(%arg0: i32) -> (i32, i32) {
    %c0_i32 = arith.constant 0 : i32
    %c0_i32_0 = arith.constant 0 : i32
    return %arg0, %c0_i32 : i32, i32
  }
  func.func @transform_1(%arg0: i32) -> (i32, i32) {
    %c0_i32 = arith.constant 0 : i32
    %c0_i32_0 = arith.constant 0 : i32
    %c0_i32_1 = arith.constant 0 : i32
    return %c0_i32, %c0_i32_0 : i32, i32
  }
  func.func @transform_2(%arg0: i32) -> (i32, i32) {
    %c0_i32 = arith.constant 0 : i32
    %c0_i32_0 = arith.constant 0 : i32
    %c0_i32_1 = arith.constant 0 : i32
    return %c0_i32, %c0_i32_0 : i32, i32
  }
  func.func @transform_3(%arg0: i32) -> (i32, i32) {
    %c0_i32 = arith.constant 0 : i32
    %c0_i32_0 = arith.constant 0 : i32
    return %arg0, %c0_i32 : i32, i32
  }
}

</mosaic_0001>

<bundles_post_ra>
// kernel: tpu_custom_call.1
= control target key start
LH: loop header
LB: loop body
LE: loop exit
PB: predicated region body
PF: predicated region fallthrough
CT: control target
= control target key end

     0   :  { %s2008_s0 = inlined_call_operand.vmem [shape: f32[8,128], index: 0, kind: input, shape index: {}]   ;;  %s2009_s1 = inlined_call_operand.vmem [shape: f32[1152,32], index: 1, kind: input, shape index: {}]   ;;  %s2010_s2 = inlined_call_operand.vmem [shape: f32[288,128], index: 2, kind: input, shape index: {}]   ;;  %s2011_s3 = inlined_call_operand.hbm [shape: f32[8,128], index: 3, kind: output, shape index: {}]  }
   0x1   :  { %v142_v0 = vld [vmem:[%s2009_s1 + $0xf8] sm:$0xff]  ;;  %v141_v3 = vld [vmem:[%s2009_s1 + $0xf0] sm:$0xff]  ;;  %v140_v7 = vld [vmem:[%s2009_s1 + $0xe8] sm:$0xff] }
   0x2   :  { %v126_v1 = vld [vmem:[%s2009_s1 + $0x78] sm:$0xff]  ;;  %932 = vmatprep.subr.mxu0 %v142_v0  ;;  %v125_v5 = vld [vmem:[%s2009_s1 + $0x70] sm:$0xff]  ;;  %v124_v9 = vld [vmem:[%s2009_s1 + $0x68] sm:$0xff] }
   0x3   :  { %v174_v2 = vld [vmem:[%s2009_s1 + $0x1f8] sm:$0xff]  ;;  %933 = vmatpush3.msra.mxu0 %v126_v1  ;;  %v173_v6 = vld [vmem:[%s2009_s1 + $0x1f0] sm:$0xff]  ;;  %v172_v10 = vld [vmem:[%s2009_s1 + $0x1e8] sm:$0xff] }
   0x4   :  { %967 = vmatprep.subr.mxu1 %v174_v2  ;;  %v158_v4 = vld [vmem:[%s2009_s1 + $0x178] sm:$0xff]  ;;  %v157_v8 = vld [vmem:[%s2009_s1 + $0x170] sm:$0xff]  ;;  %934 = vmatprep.subr.mxu0 %v141_v3  ;;  %v139_v11 = vld [vmem:[%s2009_s1 + $0xe0] sm:$0xff] }
   0x5   :  { %968 = vmatpush3.msra.mxu1 %v158_v4  ;;  %935 = vmatpush3.msra.mxu0 %v125_v5  ;;  %v156_v12 = vld [vmem:[%s2009_s1 + $0x168] sm:$0xff]  ;;  %v171_v13 = vld [vmem:[%s2009_s1 + $0x1e0] sm:$0xff]  ;;  %v138_v16 = vld [vmem:[%s2009_s1 + $0xd8] sm:$0xff] }
   0x6   :  { %969 = vmatprep.subr.mxu1 %v173_v6  ;;  %936 = vmatprep.subr.mxu0 %v140_v7  ;;  %v123_v14 = vld [vmem:[%s2009_s1 + $0x60] sm:$0xff]  ;;  %v170_v17 = vld [vmem:[%s2009_s1 + $0x1d8] sm:$0xff]  ;;  %v137_v20 = vld [vmem:[%s2009_s1 + $0xd0] sm:$0xff] }
   0x7   :  { %970 = vmatpush3.msra.mxu1 %v157_v8  ;;  %v155_v15 = vld [vmem:[%s2009_s1 + $0x160] sm:$0xff]  ;;  %937 = vmatpush3.msra.mxu0 %v124_v9  ;;  %v122_v18 = vld [vmem:[%s2009_s1 + $0x58] sm:$0xff]  ;;  %v169_v21 = vld [vmem:[%s2009_s1 + $0x1d0] sm:$0xff] }
   0x8   :  { %971 = vmatprep.subr.mxu1 %v172_v10  ;;  %938 = vmatprep.subr.mxu0 %v139_v11  ;;  %v154_v19 = vld [vmem:[%s2009_s1 + $0x158] sm:$0xff]  ;;  %v121_v22 = vld [vmem:[%s2009_s1 + $0x50] sm:$0xff]  ;;  %v136_v24 = vld [vmem:[%s2009_s1 + $0xc8] sm:$0xff] }
   0x9   :  { %972 = vmatpush3.msra.mxu1 %v156_v12  ;;  %939 = vmatpush3.msra.mxu0 %v123_v14  ;;  %v153_v23 = vld [vmem:[%s2009_s1 + $0x150] sm:$0xff]  ;;  %v168_v25 = vld [vmem:[%s2009_s1 + $0x1c8] sm:$0xff]  ;;  %v135_v28 = vld [vmem:[%s2009_s1 + $0xc0] sm:$0xff] }
   0xa   :  { %973 = vmatprep.subr.mxu1 %v171_v13  ;;  %940 = vmatprep.subr.mxu0 %v138_v16  ;;  %v120_v26 = vld [vmem:[%s2009_s1 + $0x48] sm:$0xff]  ;;  %v167_v29 = vld [vmem:[%s2009_s1 + $0x1c0] sm:$0xff]  ;;  %v134_v32 = vld [vmem:[%s2009_s1 + $0xb8] sm:$0xff] }
   0xb   :  { %974 = vmatpush3.msra.mxu1 %v155_v15  ;;  %941 = vmatpush3.msra.mxu0 %v122_v18  ;;  %v152_v27 = vld [vmem:[%s2009_s1 + $0x148] sm:$0xff]  ;;  %v119_v30 = vld [vmem:[%s2009_s1 + $0x40] sm:$0xff]  ;;  %v166_v33 = vld [vmem:[%s2009_s1 + $0x1b8] sm:$0xff] }
   0xc   :  { %975 = vmatprep.subr.mxu1 %v170_v17  ;;  %942 = vmatprep.subr.mxu0 %v137_v20  ;;  %v151_v31 = vld [vmem:[%s2009_s1 + $0x140] sm:$0xff]  ;;  %v118_v34 = vld [vmem:[%s2009_s1 + $0x38] sm:$0xff]  ;;  %v133_v36 = vld [vmem:[%s2009_s1 + $0xb0] sm:$0xff] }
   0xd   :  { %976 = vmatpush3.msra.mxu1 %v154_v19  ;;  %943 = vmatpush3.msra.mxu0 %v121_v22  ;;  %v150_v35 = vld [vmem:[%s2009_s1 + $0x138] sm:$0xff]  ;;  %v165_v37 = vld [vmem:[%s2009_s1 + $0x1b0] sm:$0xff]  ;;  %v132_v40 = vld [vmem:[%s2009_s1 + $0xa8] sm:$0xff] }
   0xe   :  { %977 = vmatprep.subr.mxu1 %v169_v21  ;;  %944 = vmatprep.subr.mxu0 %v136_v24  ;;  %v117_v38 = vld [vmem:[%s2009_s1 + $0x30] sm:$0xff]  ;;  %v164_v41 = vld [vmem:[%s2009_s1 + $0x1a8] sm:$0xff]  ;;  %v131_v44 = vld [vmem:[%s2009_s1 + $0xa0] sm:$0xff] }
   0xf   :  { %978 = vmatpush3.msra.mxu1 %v153_v23  ;;  %945 = vmatpush3.msra.mxu0 %v120_v26  ;;  %v149_v39 = vld [vmem:[%s2009_s1 + $0x130] sm:$0xff]  ;;  %v116_v42 = vld [vmem:[%s2009_s1 + $0x28] sm:$0xff]  ;;  %v163_v45 = vld [vmem:[%s2009_s1 + $0x1a0] sm:$0xff] }
  0x10   :  { %979 = vmatprep.subr.mxu1 %v168_v25  ;;  %946 = vmatprep.subr.mxu0 %v135_v28  ;;  %v148_v43 = vld [vmem:[%s2009_s1 + $0x128] sm:$0xff]  ;;  %v115_v46 = vld [vmem:[%s2009_s1 + $0x20] sm:$0xff]  ;;  %v130_v49 = vld [vmem:[%s2009_s1 + $0x98] sm:$0xff] }
  0x11   :  { %980 = vmatpush3.msra.mxu1 %v152_v27  ;;  %947 = vmatpush3.msra.mxu0 %v119_v30  ;;  %v147_v47 = vld [vmem:[%s2009_s1 + $0x120] sm:$0xff]  ;;  %v162_v50 = vld [vmem:[%s2009_s1 + $0x198] sm:$0xff]  ;;  %v129_v55 = vld [vmem:[%s2009_s1 + $0x90] sm:$0xff] }
  0x12   :  { %981 = vmatprep.subr.mxu1 %v167_v29  ;;  %948 = vmatprep.subr.mxu0 %v134_v32  ;;  %v1399_v48 = vld [vmem:[%s2008_s0] sm:$0xff]  ;;  %v114_v53 = vld [vmem:[%s2009_s1 + $0x18] sm:$0xff]  ;;  %v161_v56 = vld [vmem:[%s2009_s1 + $0x190] sm:$0xff] }
  0x13   :  { %982 = vmatpush3.msra.mxu1 %v151_v31  ;;  %949 = vmatpush3.msra.mxu0 %v118_v34  ;;  %v928_v51 = vadd.f32 2.2, %v1399_v48  ;;  %v927_v52 = vmul.f32 -1.442695, %v1399_v48  ;;  %v146_v54 = vld [vmem:[%s2009_s1 + $0x118] sm:$0xff]  ;;  %v113_v58 = vld [vmem:[%s2009_s1 + $0x10] sm:$0xff] }
  0x14   :  { %983 = vmatprep.subr.mxu1 %v166_v33  ;;  %950 = vmatprep.subr.mxu0 %v133_v36  ;;  %v145_v59 = vld [vmem:[%s2009_s1 + $0x110] sm:$0xff]  ;;  %v128_v60 = vld [vmem:[%s2009_s1 + $0x88] sm:$0xff]  ;;  %v127_v1 = vld [vmem:[%s2009_s1 + $0x80] sm:$0xff] }
  0x15   :  { %984 = vmatpush3.msra.mxu1 %v150_v35  ;;  %951 = vmatpush3.msra.mxu0 %v117_v38  ;;  %v24_v57 = vmul.f32 2.5, %v928_v51  ;;  %1196 = vpow2.f32 %v927_v52  ;;  %v160_v61 = vld [vmem:[%s2009_s1 + $0x188] sm:$0xff]  ;;  %v159_v2 = vld [vmem:[%s2009_s1 + $0x180] sm:$0xff]  ;;  %v206_v8 = vld [vmem:[%s2009_s1 + $0x2f8] sm:$0xff] }
  0x16   :  { %985 = vmatprep.subr.mxu1 %v165_v37  ;;  %952 = vmatprep.subr.mxu0 %v132_v40  ;;  %v112_v63 = vld [vmem:[%s2009_s1 + $0x8] sm:$0xff]  ;;  %v111_v4 = vld [vmem:[%s2009_s1] sm:$0xff]  ;;  %v238_v9 = vld [vmem:[%s2009_s1 + $0x3f8] sm:$0xff] }
  0x17   :  { %986 = vmatpush3.msra.mxu1 %v149_v39  ;;  %953 = vmatpush3.msra.mxu0 %v116_v42  ;;  %v1433_v62 = vfloor.f32 %v24_v57  ;;  %v144_v0 = vld [vmem:[%s2009_s1 + $0x108] sm:$0xff]  ;;  %v143_v5 = vld [vmem:[%s2009_s1 + $0x100] sm:$0xff]  ;;  %v222_v52 = vld [vmem:[%s2009_s1 + $0x378] sm:$0xff] }
  0x18   :  { %987 = vmatprep.subr.mxu1 %v164_v41  ;;  %954 = vmatprep.subr.mxu0 %v131_v44 }
  0x19   :  { %988 = vmatpush3.msra.mxu1 %v148_v43  ;;  %955 = vmatpush3.msra.mxu0 %v115_v46  ;;  %v26_v3 = vsub.f32 %v24_v57, %v1433_v62  ;;  %vm44_vm0 = vcmp.eq.f32.partialorder %v1433_v62, 0.0  ;;  %vm46_vm1 = vcmp.eq.f32.partialorder %v1433_v62, 2.0  ;;  %vm45_vm2 = vcmp.eq.f32.partialorder %v1433_v62, 1.0 }
  0x1a   :  { %989 = vmatprep.subr.mxu1 %v163_v45  ;;  %956 = vmatprep.subr.mxu0 %v130_v49  ;;  %vm47_vm3 = vcmp.eq.f32.partialorder %v1433_v62, 3.0  ;;  %vm48_vm4 = vcmp.eq.f32.partialorder %v1433_v62, 4.0  ;;  %vm49_vm5 = vcmp.eq.f32.partialorder %v1433_v62, 5.0  ;;  %vm50_vm6 = vcmp.eq.f32.partialorder %v1433_v62, 6.0 }
  0x1b   :  { %990 = vmatpush3.msra.mxu1 %v147_v47  ;;  %957 = vmatpush3.msra.mxu0 %v114_v53  ;;  %v27_v6 = vmul.f32 %v26_v3, %v26_v3  ;;  %v29_v7 = vsub.f32 1.0, %v26_v3  ;;  %vm51_vm7 = vcmp.eq.f32.partialorder %v1433_v62, 7.0  ;;  %vm52_vm8 = vcmp.eq.f32.partialorder %v1433_v62, 8.0 }
  0x1c   :  { %991 = vmatprep.subr.mxu1 %v162_v50  ;;  %958 = vmatprep.subr.mxu0 %v129_v55  ;;  %vm53_vm9 = vcmp.eq.f32.partialorder %v1433_v62, 9.0  ;;  %vm54_vm10 = vcmp.eq.f32.partialorder %v1433_v62, 10.0 }
  0x1d   :  { %992 = vmatpush3.msra.mxu1 %v146_v54  ;;  %959 = vmatpush3.msra.mxu0 %v113_v58  ;;  %v28_v10 = vmul.f32 %v27_v6, %v26_v3  ;;  %v31_v11 = vadd.f32 %v27_v6, %v26_v3  ;;  %v37_v12 = vmul.f32 6.0, %v27_v6  ;;  %v41_v13 = vmul.f32 %v29_v7, %v29_v7  ;;  %v237_v54 = vld [vmem:[%s2009_s1 + $0x3f0] sm:$0xff] }
  0x1e   :  { %993 = vmatprep.subr.mxu1 %v161_v56  ;;  %960 = vmatprep.subr.mxu0 %v128_v60 }
  0x1f   :  { %994 = vmatpush3.msra.mxu1 %v145_v59  ;;  %961 = vmatpush3.msra.mxu0 %v112_v63  ;;  %v32_v14 = vsub.f32 %v31_v11, %v28_v10  ;;  %v36_v15 = vmul.f32 3.0, %v28_v10  ;;  %v42_v16 = vmul.f32 %v41_v13, %v29_v7  ;;  %v1460_v17 = vmul.f32 0.16666667, %v28_v10  ;;  %v221_v59 = vld [vmem:[%s2009_s1 + $0x370] sm:$0xff]  ;;  %v236_v63 = vld [vmem:[%s2009_s1 + $0x3e8] sm:$0xff] }
  0x20   :  { %995 = vmatprep.subr.mxu1 %v160_v61  ;;  %962 = vmatprep.subr.mxu0 %v127_v1 }
  0x21   :  { %996 = vmatpush3.msra.mxu1 %v144_v0  ;;  %963 = vmatpush3.msra.mxu0 %v111_v4  ;;  %v33_v18 = vmul.f32 3.0, %v32_v14  ;;  %v38_v19 = vsub.f32 %v36_v15, %v37_v12  ;;  %v1466_v23 = vmul.f32 0.16666667, %v42_v16  ;;  %v55_v27 = vsel %vm44_vm0, %v1460_v17, 0.0 }
  0x22   :  { %997 = vmatprep.subr.mxu1 %v159_v2  ;;  %1002 = vmatprep.subr.mxu0 %v206_v8  ;;  %v1197_v20 = vpop.eup %1196  ;;  %v69_v28 = vsel %vm46_vm1, %v1460_v17, 0.0  ;;  %v62_v29 = vsel %vm45_vm2, %v1460_v17, 0.0  ;;  %v97_v44 = vsel %vm50_vm6, %v1460_v17, 0.0  ;;  %v104_v56 = vsel %vm51_vm7, %v1460_v17, 0.0 }
  0x23   :  { %998 = vmatpush3.msra.mxu1 %v143_v5  ;;  %v34_v21 = vadd.f32 1.0, %v33_v18  ;;  %v39_v22 = vadd.f32 4.0, %v38_v19  ;;  %v19_v24 = vadd.f32 1.0, %v1197_v20  ;;  %v60_v37 = vsel %vm47_vm3, %v1466_v23, 0.0 }
  0x24   :  { %1037 = vmatprep.subr.mxu1 %v238_v9  ;;  %v74_v38 = vsel %vm49_vm5, %v1466_v23, 0.0  ;;  %v67_v43 = vsel %vm48_vm4, %v1466_v23, 0.0  ;;  %v102_v55 = vsel %vm53_vm9, %v1466_v23, 0.0  ;;  %v109_v0 = vsel %vm54_vm10, %v1466_v23, 0.0 }
  0x25   :  { %v1470_v25 = vmul.f32 0.16666667, %v34_v21  ;;  %v1472_v26 = vmul.f32 0.16666667, %v39_v22  ;;  %1198 = vrcp.f32 %v19_v24 }
  0x27   :  { %v56_v30 = vsel %vm45_vm2, %v1470_v25, 0.0  ;;  %v58_v31 = vsel %vm46_vm1, %v1472_v26, 0.0  ;;  %v63_v32 = vsel %vm46_vm1, %v1470_v25, 0.0  ;;  %v70_v33 = vsel %vm47_vm3, %v1470_v25, 0.0 }
  0x28   :  { %v57_v34 = vadd.f32 %v56_v30, %v55_v27  ;;  %v71_v35 = vadd.f32 %v70_v33, %v69_v28  ;;  %v72_v36 = vsel %vm48_vm4, %v1472_v26, 0.0  ;;  %v64_v39 = vadd.f32 %v63_v32, %v62_v29 }
  0x29   :  { %v65_v40 = vsel %vm47_vm3, %v1472_v26, 0.0  ;;  %v98_v49 = vsel %vm51_vm7, %v1470_v25, 0.0  ;;  %v100_v50 = vsel %vm52_vm8, %v1472_v26, 0.0  ;;  %v105_v57 = vsel %vm52_vm8, %v1470_v25, 0.0 }
  0x2a   :  { %v59_v41 = vadd.f32 %v58_v31, %v57_v34  ;;  %v73_v42 = vadd.f32 %v72_v36, %v71_v35  ;;  %v66_v45 = vadd.f32 %v65_v40, %v64_v39  ;;  %v99_v53 = vadd.f32 %v98_v49, %v97_v44 }
  0x2b   :  { %v107_v58 = vsel %vm53_vm9, %v1472_v26, 0.0  ;;  %v106_v61 = vadd.f32 %v105_v57, %v104_v56 }
  0x2c   :  { %v61_v46 = vadd.f32 %v60_v37, %v59_v41  ;;  %v75_v47 = vadd.f32 %v74_v38, %v73_v42  ;;  %v68_v51 = vadd.f32 %v67_v43, %v66_v45  ;;  %v101_v60 = vadd.f32 %v100_v50, %v99_v53 }
  0x2e   :  { %319 = vmatprep.mubr.f32.mxu0 %v61_v46  ;;  %389 = vmatprep.mubr.f32.mxu1 %v75_v47 }
  0x2f   :  { %390 = vmatmul.mubr.f32.vlgmr.msra.gmra.mxu1 %v68_v51 }
  0x30   :  { %1038 = vmatpush3.msra.mxu1 %v222_v52 }
  0x31   :  { %8 = vsyncpa [#allocation3], 0  ;;  %1039 = vmatprep.subr.mxu1 %v237_v54  ;;  %v220_v1 = vld [vmem:[%s2009_s1 + $0x368] sm:$0xff]  ;;  %v103_v2 = vadd.f32 %v102_v55, %v101_v60  ;;  %v108_v3 = vadd.f32 %v107_v58, %v106_v61  ;;  %v235_v4 = vld [vmem:[%s2009_s1 + $0x3e0] sm:$0xff]  ;;  %v83_v32 = vsel %vm48_vm4, %v1460_v17, 0.0  ;;  %v84_v33 = vsel %vm49_vm5, %v1470_v25, 0.0 }
  0x32   :  { %1040 = vmatpush3.msra.mxu1 %v221_v59  ;;  %v1199_v5 = vpop.eup %1198  ;;  %v219_v6 = vld [vmem:[%s2009_s1 + $0x360] sm:$0xff]  ;;  %v190_v9 = vld [vmem:[%s2009_s1 + $0x278] sm:$0xff]  ;;  %v205_v11 = vld [vmem:[%s2009_s1 + $0x2f0] sm:$0xff]  ;;  %v85_v40 = vadd.f32 %v84_v33, %v83_v32  ;;  %v90_v41 = vsel %vm49_vm5, %v1460_v17, 0.0  ;;  %v91_v42 = vsel %vm50_vm6, %v1470_v25, 0.0  ;;  %v86_v45 = vsel %vm50_vm6, %v1472_v26, 0.0 }
  0x33   :  { %1041 = vmatprep.subr.mxu1 %v236_v63  ;;  %529 = vmatprep.mubr.f32.mxu1 %v103_v2  ;;  %v1548_v7 = vadd.f32 %v109_v0, %v108_v3  ;;  %v22_v8 = vmul.f32 %v1199_v5, %v1399_v48  ;;  %v234_v10 = vld [vmem:[%s2009_s1 + $0x3d8] sm:$0xff]  ;;  %v189_v48 = vld [vmem:[%s2009_s1 + $0x270] sm:$0xff]  ;;  %v204_v14 = vld [vmem:[%s2009_s1 + $0x2e8] sm:$0xff]  ;;  %v92_v51 = vadd.f32 %v91_v42, %v90_v41  ;;  %v88_v57 = vsel %vm51_vm7, %v1466_v23, 0.0  ;;  %s1228_s10 = smov 96   ;;  %s1230_s11 = smov 64  }
  0x34   :  { %1042 = vmatpush3.msra.mxu1 %v220_v1  ;;  %v218_v12 = vld [vmem:[%s2009_s1 + $0x358] sm:$0xff]  ;;  %v233_v13 = vld [vmem:[%s2009_s1 + $0x3d0] sm:$0xff]  ;;  %v188_v16 = vld [vmem:[%s2009_s1 + $0x268] sm:$0xff]  ;;  %v87_v54 = vadd.f32 %v86_v45, %v85_v40  ;;  %v93_v58 = vsel %vm51_vm7, %v1472_v26, 0.0  ;;  %v76_v61 = vsel %vm47_vm3, %v1460_v17, 0.0  ;;  %v77_v63 = vsel %vm48_vm4, %v1470_v25, 0.0 }
  0x35   :  { %1043 = vmatprep.subr.mxu1 %v235_v4  ;;  %320 = vmatmul.mubr.f32.vlgmr.msra.gmra.mxu0 %v22_v8  ;;  %v217_v15 = vld [vmem:[%s2009_s1 + $0x350] sm:$0xff]  ;;  %v232_v18 = vld [vmem:[%s2009_s1 + $0x3c8] sm:$0xff]  ;;  %v203_v19 = vld [vmem:[%s2009_s1 + $0x2e0] sm:$0xff]  ;;  %v94_v3 = vadd.f32 %v93_v58, %v92_v51  ;;  %v95_v5 = vsel %vm52_vm8, %v1466_v23, 0.0  ;;  %vm1227_vm11 = vmmov 0   ;;  %vm726_vm8 = vcmask 523264  }
  0x36   :  { %1044 = vmatpush3.msra.mxu1 %v219_v6  ;;  %1003 = vmatpush3.msra.mxu0 %v190_v9  ;;  %v216_v20 = vld [vmem:[%s2009_s1 + $0x348] sm:$0xff]  ;;  %v187_v21 = vld [vmem:[%s2009_s1 + $0x260] sm:$0xff]  ;;  %v202_v24 = vld [vmem:[%s2009_s1 + $0x2d8] sm:$0xff]  ;;  %v89_v25 = vadd.f32 %v88_v57, %v87_v54  ;;  %v78_v9 = vadd.f32 %v77_v63, %v76_v61  ;;  %vm728_vm9 = vcmask 785408   ;;  %s1231_s12 = smov [#allocation2]  }
  0x37   :  { %1045 = vmatprep.subr.mxu1 %v234_v10  ;;  %1004 = vmatprep.subr.mxu0 %v205_v11  ;;  %v231_v22 = vld [vmem:[%s2009_s1 + $0x3c0] sm:$0xff]  ;;  %v186_v28 = vld [vmem:[%s2009_s1 + $0x258] sm:$0xff]  ;;  %v201_v30 = vld [vmem:[%s2009_s1 + $0x2d0] sm:$0xff]  ;;  %v79_v10 = vsel %vm49_vm5, %v1472_v26, 0.0  ;;  %s919_s13 = sshll.u32 %s1231_s12, 4  ;;  %s920_s13 = int_to_ptr.vmem [resolvable:$true] %s919_s13 }
  0x38   :  { %1046 = vmatpush3.msra.mxu1 %v218_v12  ;;  %1005 = vmatpush3.msra.mxu0 %v189_v48  ;;  %v215_v27 = vld [vmem:[%s2009_s1 + $0x340] sm:$0xff]  ;;  %v230_v29 = vld [vmem:[%s2009_s1 + $0x3b8] sm:$0xff]  ;;  %v185_v34 = vld [vmem:[%s2009_s1 + $0x250] sm:$0xff]  ;;  %s1204_s14 = scalar_lea.vmem %s920_s13, 128  ;;  %p1209_p1 = scmp.lt.s32.totalorder %s920_s13, %s920_s13 }
  0x39   :  { %1047 = vmatprep.subr.mxu1 %v233_v13  ;;  %1006 = vmatprep.subr.mxu0 %v204_v14  ;;  %v214_v31 = vld [vmem:[%s2009_s1 + $0x338] sm:$0xff]  ;;  %v229_v35 = vld [vmem:[%s2009_s1 + $0x3b0] sm:$0xff]  ;;  %v200_v36 = vld [vmem:[%s2009_s1 + $0x2c8] sm:$0xff]  ;;  %v96_v13 = vadd.f32 %v95_v5, %v94_v3  ;;  %p1205_p0 = scmp.ne.s32.totalorder %s920_s13, %s1204_s14  ;;  %p1210_p2 = scmp.lt.s32.totalorder %s1204_s14, %s1204_s14 }
  0x3a   :  { %1048 = vmatpush3.msra.mxu1 %v217_v15  ;;  %1007 = vmatpush3.msra.mxu0 %v188_v16  ;;  %v213_v37 = vld [vmem:[%s2009_s1 + $0x330] sm:$0xff]  ;;  %v184_v38 = vld [vmem:[%s2009_s1 + $0x248] sm:$0xff]  ;;  %v199_v43 = vld [vmem:[%s2009_s1 + $0x2c0] sm:$0xff]  ;;  %v80_v16 = vadd.f32 %v79_v10, %v78_v9 }
  0x3b   :  { %1049 = vmatprep.subr.mxu1 %v232_v18  ;;  %1008 = vmatprep.subr.mxu0 %v203_v19  ;;  %v228_v39 = vld [vmem:[%s2009_s1 + $0x3a8] sm:$0xff]  ;;  %v183_v46 = vld [vmem:[%s2009_s1 + $0x240] sm:$0xff]  ;;  %v198_v49 = vld [vmem:[%s2009_s1 + $0x2b8] sm:$0xff]  ;;  %v81_v19 = vsel %vm50_vm6, %v1466_v23, 0.0  ;;  %v1226_v23 = vmov 0.0   ;;  %vm724_vm6 = vcmask 261120   ;;  %p1211_p3 = por %p1210_p2, %p1209_p1 }
  0x3c   :  { %1050 = vmatpush3.msra.mxu1 %v216_v20  ;;  %1009 = vmatpush3.msra.mxu0 %v187_v21  ;;  %v212_v44 = vld [vmem:[%s2009_s1 + $0x328] sm:$0xff]  ;;  %v227_v47 = vld [vmem:[%s2009_s1 + $0x3a0] sm:$0xff]  ;;  %v182_v52 = vld [vmem:[%s2009_s1 + $0x238] sm:$0xff] }
  0x3d   :  { %1051 = vmatprep.subr.mxu1 %v231_v22  ;;  %1010 = vmatprep.subr.mxu0 %v202_v24  ;;  %v211_v50 = vld [vmem:[%s2009_s1 + $0x320] sm:$0xff]  ;;  %v226_v53 = vld [vmem:[%s2009_s1 + $0x398] sm:$0xff]  ;;  %v197_v55 = vld [vmem:[%s2009_s1 + $0x2b0] sm:$0xff]  ;;  %v82_v24 = vadd.f32 %v81_v19, %v80_v16  ;;  %p1212_p4 = pnand %p1211_p3, %p1205_p0 }
  0x3e   :  { %1052 = vmatpush3.msra.mxu1 %v215_v27  ;;  %1011 = vmatpush3.msra.mxu0 %v186_v28  ;;  %v210_v56 = vld [vmem:[%s2009_s1 + $0x318] sm:$0xff]  ;;  %v181_v59 = vld [vmem:[%s2009_s1 + $0x230] sm:$0xff]  ;;  %v196_v0 = vld [vmem:[%s2009_s1 + $0x2a8] sm:$0xff] }
  0x3f   :  { %1053 = vmatprep.subr.mxu1 %v230_v29  ;;  %1012 = vmatprep.subr.mxu0 %v201_v30  ;;  %v225_v60 = vld [vmem:[%s2009_s1 + $0x390] sm:$0xff]  ;;  %v180_v2 = vld [vmem:[%s2009_s1 + $0x228] sm:$0xff]  ;;  %v195_v4 = vld [vmem:[%s2009_s1 + $0x2a0] sm:$0xff] }
  0x40   :  { %1054 = vmatpush3.msra.mxu1 %v214_v31  ;;  %1013 = vmatpush3.msra.mxu0 %v185_v34  ;;  %v209_v1 = vld [vmem:[%s2009_s1 + $0x310] sm:$0xff]  ;;  %v224_v17 = vld [vmem:[%s2009_s1 + $0x388] sm:$0xff]  ;;  %v179_v6 = vld [vmem:[%s2009_s1 + $0x220] sm:$0xff] }
  0x41   :  { %1055 = vmatprep.subr.mxu1 %v229_v35  ;;  %1014 = vmatprep.subr.mxu0 %v200_v36  ;;  %v208_v8 = vld [vmem:[%s2009_s1 + $0x308] sm:$0xff]  ;;  %v194_v11 = vld [vmem:[%s2009_s1 + $0x298] sm:$0xff]  ;;  %v223_v12 = vld [vmem:[%s2009_s1 + $0x380] sm:$0xff] }
  0x42   :  { %1056 = vmatpush3.msra.mxu1 %v213_v37  ;;  %1015 = vmatpush3.msra.mxu0 %v184_v38  ;;  %v178_v48 = vld [vmem:[%s2009_s1 + $0x218] sm:$0xff]  ;;  %v207_v26 = vld [vmem:[%s2009_s1 + $0x300] sm:$0xff]  ;;  %v193_v14 = vld [vmem:[%s2009_s1 + $0x290] sm:$0xff] }
  0x43   :  { %1057 = vmatprep.subr.mxu1 %v228_v39  ;;  %1016 = vmatprep.subr.mxu0 %v199_v43  ;;  %v177_v15 = vld [vmem:[%s2009_s1 + $0x210] sm:$0xff]  ;;  %v192_v18 = vld [vmem:[%s2009_s1 + $0x288] sm:$0xff]  ;;  %v191_v21 = vld [vmem:[%s2009_s1 + $0x280] sm:$0xff] }
  0x44   :  { %1058 = vmatpush3.msra.mxu1 %v212_v44  ;;  %1017 = vmatpush3.msra.mxu0 %v183_v46  ;;  %v176_v20 = vld [vmem:[%s2009_s1 + $0x208] sm:$0xff]  ;;  %v175_v22 = vld [vmem:[%s2009_s1 + $0x200] sm:$0xff]  ;;  %v254_v62 = vld [vmem:[%s2009_s1 + $0x478] sm:$0xff] }
  0x45   :  { %1059 = vmatprep.subr.mxu1 %v227_v47  ;;  %1018 = vmatprep.subr.mxu0 %v198_v49  ;;  %v253_v27 = vld [vmem:[%s2009_s1 + $0x470] sm:$0xff]  ;;  %v252_v28 = vld [vmem:[%s2009_s1 + $0x468] sm:$0xff]  ;;  %v251_v29 = vld [vmem:[%s2009_s1 + $0x460] sm:$0xff] }
  0x46   :  { %1060 = vmatpush3.msra.mxu1 %v211_v50  ;;  %1019 = vmatpush3.msra.mxu0 %v182_v52  ;;  %v250_v30 = vld [vmem:[%s2009_s1 + $0x458] sm:$0xff]  ;;  %v249_v31 = vld [vmem:[%s2009_s1 + $0x450] sm:$0xff]  ;;  %v248_v32 = vld [vmem:[%s2009_s1 + $0x448] sm:$0xff] }
  0x47   :  { %1061 = vmatprep.subr.mxu1 %v226_v53  ;;  %1020 = vmatprep.subr.mxu0 %v197_v55  ;;  %v247_v33 = vld [vmem:[%s2009_s1 + $0x440] sm:$0xff]  ;;  %v246_v34 = vld [vmem:[%s2009_s1 + $0x438] sm:$0xff]  ;;  %v245_v35 = vld [vmem:[%s2009_s1 + $0x430] sm:$0xff] }
  0x48   :  { %1062 = vmatpush3.msra.mxu1 %v210_v56  ;;  %1021 = vmatpush3.msra.mxu0 %v181_v59  ;;  %v244_v36 = vld [vmem:[%s2009_s1 + $0x428] sm:$0xff]  ;;  %v243_v37 = vld [vmem:[%s2009_s1 + $0x420] sm:$0xff]  ;;  %v242_v38 = vld [vmem:[%s2009_s1 + $0x418] sm:$0xff] }
  0x49   :  { %1063 = vmatprep.subr.mxu1 %v225_v60  ;;  %1022 = vmatprep.subr.mxu0 %v196_v0  ;;  %v241_v39 = vld [vmem:[%s2009_s1 + $0x410] sm:$0xff]  ;;  %v240_v40 = vld [vmem:[%s2009_s1 + $0x408] sm:$0xff]  ;;  %v239_v41 = vld [vmem:[%s2009_s1 + $0x400] sm:$0xff] }
  0x4a   :  { %1064 = vmatpush3.msra.mxu1 %v209_v1  ;;  %1023 = vmatpush3.msra.mxu0 %v180_v2  ;;  %v768_v42 = vld [vmem:[%s2010_s2 + $0x118] sm:$0xff]  ;;  %v767_v43 = vld [vmem:[%s2010_s2 + $0x110] sm:$0xff]  ;;  %v766_v44 = vld [vmem:[%s2010_s2 + $0x108] sm:$0xff] }
  0x4b   :  { %1065 = vmatprep.subr.mxu1 %v224_v17  ;;  %1024 = vmatprep.subr.mxu0 %v195_v4  ;;  %v764_v45 = vld [vmem:[%s2010_s2 + $0xf8] sm:$0xff]  ;;  %v763_v47 = vld [vmem:[%s2010_s2 + $0xf0] sm:$0xff]  ;;  %v762_v50 = vld [vmem:[%s2010_s2 + $0xe8] sm:$0xff] }
  0x4c   :  { %459 = vmatprep.mubr.f32.mxu0 %v89_v25  ;;  %1025 = vmatpush3.msra.mxu0 %v179_v6  ;;  %v748_v46 = vld [vmem:[%s2010_s2 + $0x78] sm:$0xff]  ;;  %v747_v49 = vld [vmem:[%s2010_s2 + $0x70] sm:$0xff]  ;;  %v746_v51 = vld [vmem:[%s2010_s2 + $0x68] sm:$0xff] }
  0x4d   :  { %1066 = vmatpush3.msra.mxu1 %v208_v8  ;;  %1026 = vmatprep.subr.mxu0 %v194_v11  ;;  %v761_v52 = vld [vmem:[%s2010_s2 + $0xe0] sm:$0xff]  ;;  %v760_v54 = vld [vmem:[%s2010_s2 + $0xd8] sm:$0xff]  ;;  %v759_v56 = vld [vmem:[%s2010_s2 + $0xd0] sm:$0xff] }
  0x4e   :  { %1067 = vmatprep.subr.mxu1 %v223_v12  ;;  %1027 = vmatpush3.msra.mxu0 %v178_v48  ;;  %v745_v53 = vld [vmem:[%s2010_s2 + $0x60] sm:$0xff]  ;;  %v744_v55 = vld [vmem:[%s2010_s2 + $0x58] sm:$0xff]  ;;  %v743_v57 = vld [vmem:[%s2010_s2 + $0x50] sm:$0xff] }
  0x4f   :  { %1068 = vmatpush3.msra.mxu1 %v207_v26  ;;  %1028 = vmatprep.subr.mxu0 %v193_v14  ;;  %v758_v58 = vld [vmem:[%s2010_s2 + $0xc8] sm:$0xff]  ;;  %v757_v60 = vld [vmem:[%s2010_s2 + $0xc0] sm:$0xff]  ;;  %v756_v63 = vld [vmem:[%s2010_s2 + $0xb8] sm:$0xff] }
  0x50   :  { %530 = vmatmul.mubr.f32.vlgmr.msra.gmra.mxu1 %v96_v13  ;;  %1029 = vmatpush3.msra.mxu0 %v177_v15  ;;  %v742_v59 = vld [vmem:[%s2010_s2 + $0x48] sm:$0xff]  ;;  %v741_v61 = vld [vmem:[%s2010_s2 + $0x40] sm:$0xff]  ;;  %v740_v0 = vld [vmem:[%s2010_s2 + $0x38] sm:$0xff] }
  0x51   :  { %1030 = vmatprep.subr.mxu0 %v192_v18  ;;  %1089 = vmatprep.subr.mxu1 %v764_v45  ;;  %v755_v1 = vld [vmem:[%s2010_s2 + $0xb0] sm:$0xff]  ;;  %v754_v17 = vld [vmem:[%s2010_s2 + $0xa8] sm:$0xff]  ;;  %v753_v3 = vld [vmem:[%s2010_s2 + $0xa0] sm:$0xff] }
  0x52   :  { %1031 = vmatpush3.msra.mxu0 %v176_v20  ;;  %1090 = vmatpush3.msra.mxu1 %v748_v46  ;;  %v739_v2 = vld [vmem:[%s2010_s2 + $0x30] sm:$0xff]  ;;  %v738_v25 = vld [vmem:[%s2010_s2 + $0x28] sm:$0xff] }
  0x53   :  { %1032 = vmatprep.subr.mxu0 %v191_v21  ;;  %1091 = vmatprep.subr.mxu1 %v763_v47 }
  0x54   :  { %1033 = vmatpush3.msra.mxu0 %v175_v22  ;;  %1092 = vmatpush3.msra.mxu1 %v747_v49 }
  0x55   :  { %460 = vmatmul.mubr.f32.vlgmr.msra.gmra.mxu0 %v82_v24  ;;  %1129 = vmatprep.subr.mxu0 %v1226_v23 }
  0x56   :  { %1130 = vmatpush3.msra.mxu0 %v254_v62  ;;  %1161 = vmatprep.mubr.msk.f32.mxu0 %vm1227_vm11, %v1226_v23 }
  0x57   :  { %1131 = vmatprep.subr.mxu0 %v1226_v23  ;;  %1093 = vmatprep.subr.mxu1 %v762_v50 }
  0x58   :  { %1132 = vmatpush3.msra.mxu0 %v253_v27  ;;  %1094 = vmatpush3.msra.mxu1 %v746_v51 }
  0x59   :  { %1133 = vmatprep.subr.mxu0 %v1226_v23  ;;  %1095 = vmatprep.subr.mxu1 %v761_v52 }
  0x5a   :  { %1134 = vmatpush3.msra.mxu0 %v252_v28  ;;  %1096 = vmatpush3.msra.mxu1 %v745_v53 }
  0x5b   :  { %1135 = vmatprep.subr.mxu0 %v1226_v23  ;;  %1097 = vmatprep.subr.mxu1 %v760_v54 }
  0x5c   :  { %1136 = vmatpush3.msra.mxu0 %v251_v29  ;;  %1098 = vmatpush3.msra.mxu1 %v744_v55 }
  0x5d   :  { %1137 = vmatprep.subr.mxu0 %v1226_v23  ;;  %1099 = vmatprep.subr.mxu1 %v759_v56 }
  0x5e   :  { %1138 = vmatpush3.msra.mxu0 %v250_v30  ;;  %1100 = vmatpush3.msra.mxu1 %v743_v57 }
  0x5f   :  { %1139 = vmatprep.subr.mxu0 %v1226_v23  ;;  %1101 = vmatprep.subr.mxu1 %v758_v58 }
  0x60   :  { %1140 = vmatpush3.msra.mxu0 %v249_v31  ;;  %1102 = vmatpush3.msra.mxu1 %v742_v59 }
  0x61   :  { %1141 = vmatprep.subr.mxu0 %v1226_v23  ;;  %1103 = vmatprep.subr.mxu1 %v757_v60 }
  0x62   :  { %1142 = vmatpush3.msra.mxu0 %v248_v32  ;;  %1104 = vmatpush3.msra.mxu1 %v741_v61 }
  0x63   :  { %1143 = vmatprep.subr.mxu0 %v1226_v23  ;;  %1105 = vmatprep.subr.mxu1 %v756_v63 }
  0x64   :  { %1144 = vmatpush3.msra.mxu0 %v247_v33  ;;  %1106 = vmatpush3.msra.mxu1 %v740_v0  ;;  %v737_v0 = vld [vmem:[%s2010_s2 + $0x20] sm:$0xff] }
  0x65   :  { %1145 = vmatprep.subr.mxu0 %v1226_v23  ;;  %1107 = vmatprep.subr.mxu1 %v755_v1 }
  0x66   :  { %1146 = vmatpush3.msra.mxu0 %v246_v34  ;;  %1108 = vmatpush3.msra.mxu1 %v739_v2 }
  0x67   :  { %1147 = vmatprep.subr.mxu0 %v1226_v23  ;;  %1109 = vmatprep.subr.mxu1 %v754_v17 }
  0x68   :  { %1148 = vmatpush3.msra.mxu0 %v245_v35  ;;  %1110 = vmatpush3.msra.mxu1 %v738_v25 }
  0x69   :  { %1149 = vmatprep.subr.mxu0 %v1226_v23  ;;  %1111 = vmatprep.subr.mxu1 %v753_v3  ;;  %v752_v3 = vld [vmem:[%s2010_s2 + $0x98] sm:$0xff] }
  0x6a   :  { %1150 = vmatpush3.msra.mxu0 %v244_v36  ;;  %1112 = vmatpush3.msra.mxu1 %v737_v0 }
  0x6b   :  { %1151 = vmatprep.subr.mxu0 %v1226_v23  ;;  %1113 = vmatprep.subr.mxu1 %v752_v3 }
  0x6c   :  { %1152 = vmatpush3.msra.mxu0 %v243_v37 }
  0x6d   :  { %1153 = vmatprep.subr.mxu0 %v1226_v23 }
  0x6e   :  { %1154 = vmatpush3.msra.mxu0 %v242_v38 }
  0x6f   :  { %1155 = vmatprep.subr.mxu0 %v1226_v23 }
  0x70   :  { %1156 = vmatpush3.msra.mxu0 %v241_v39 }
  0x71   :  { %1157 = vmatprep.subr.mxu0 %v1226_v23 }
  0x72   :  { %1158 = vmatpush3.msra.mxu0 %v240_v40 }
  0x73   :  { %1159 = vmatprep.subr.mxu0 %v1226_v23 }
  0x74   :  { %1160 = vmatpush3.msra.mxu0 %v239_v41 }
  0x75   :  { %1162 = vmatmul.mubr.f32.vlgmr.msra.gmra.mxu0 %v1548_v7  ;;  %1164 = vmatprep.subr.mxu0 %v1226_v23  ;;  %v765_v7 = vld [vmem:[%s2010_s2 + $0x100] sm:$0xff] }
  0x76   :  { %1172 = vmatprep.mubr.msk.f32.mxu0 %vm1227_vm11, %v1226_v23  ;;  %1165 = vmatpush3.msra.mxu0 %v768_v42 }
  0x77   :  { %1166 = vmatprep.subr.mxu0 %v1226_v23 }
  0x78   :  { %1167 = vmatpush3.msra.mxu0 %v767_v43 }
  0x79   :  { %1168 = vmatprep.subr.mxu0 %v1226_v23 }
  0x7a   :  { %1169 = vmatpush3.msra.mxu0 %v766_v44 }
  0x7b   :  { %1170 = vmatprep.subr.mxu0 %v1226_v23 }
  0x7c   :  { %1171 = vmatpush3.msra.mxu0 %v765_v7 }
  0xef   :  { %v999_v5 = vpop.f32.mrf.mxu1 }
  0xf1   :  { %v1000_v9 = vpop.f32.mrf.mxu1 }
  0xf2   :  { %v1001_v48 = vadd.f32 %v1000_v9, %v999_v5  ;;  %v736_v9 = vld [vmem:[%s2010_s2 + $0x18] sm:$0xff] }
  0xf3   :  { %1114 = vmatpush3.msra.mxu1 %v736_v9 }
  0xf5   :  { %v964_v4 = vpop.f32.mrf.mxu0 }
  0xf7   :  { %v965_v6 = vpop.f32.mrf.mxu0 }
  0xf8   :  { %v966_v12 = vadd.f32 %v965_v6, %v964_v4 }
  0xfa   :  { %v392_v14 = vadd.f32 %v1001_v48, %v966_v12 }
 0x110   :  { %v1069_v11 = vpop.f32.mrf.mxu1 }
 0x112   :  { %v1070_v13 = vpop.f32.mrf.mxu1 }
 0x113   :  { %v1071_v16 = vadd.f32 %v1070_v13, %v1069_v11 }
 0x115   :  { %v1034_v8 = vpop.f32.mrf.mxu0 }
 0x117   :  { %v1035_v10 = vpop.f32.mrf.mxu0 }
 0x118   :  { %v1036_v26 = vadd.f32 %v1035_v10, %v1034_v8  ;;  %v751_v10 = vld [vmem:[%s2010_s2 + $0x90] sm:$0xff] }
 0x119   :  { %1115 = vmatprep.subr.mxu1 %v751_v10 }
 0x11a   :  { %v462_v15 = vadd.f32 %v1036_v26, %v392_v14 }
 0x11c   :  { %v532_v18 = vadd.f32 %v1071_v16, %v462_v15 }
 0x135   :  { %v601_v19 = vpop.f32.mrf.mxu0 }
 0x136   :  { %v1884_v20 = vadd.f32 %v601_v19, %v532_v18  ;;  %v735_v18 = vld [vmem:[%s2010_s2 + $0x10] sm:$0xff] }
 0x137   :  { %v1163_v21 = vpop.f32.mrf.mxu0  ;;  %1116 = vmatpush3.msra.mxu1 %v735_v18 }
 0x138   :  { %v930_v22 = vadd.f32 2.2, %v1884_v20 }
 0x13a   :  { %v613_v24 = vmul.f32 2.5, %v930_v22 }
 0x13c   :  { %v1887_v62 = vfloor.f32 %v613_v24 }
 0x13e   :  { %v615_v23 = vsub.f32 %v613_v24, %v1887_v62  ;;  %vm640_vm12 = vcmp.eq.f32.partialorder %v1887_v62, 7.0  ;;  %vm641_vm13 = vcmp.eq.f32.partialorder %v1887_v62, 8.0  ;;  %vm642_vm14 = vcmp.eq.f32.partialorder %v1887_v62, 9.0 }
 0x13f   :  { %vm643_vm15 = vcmp.eq.f32.partialorder %v1887_v62, 10.0  ;;  %vm635_vm0 = vcmp.eq.f32.partialorder %v1887_v62, 2.0  ;;  %vm636_vm1 = vcmp.eq.f32.partialorder %v1887_v62, 3.0  ;;  %vm637_vm2 = vcmp.eq.f32.partialorder %v1887_v62, 4.0 }
 0x140   :  { %v616_v27 = vmul.f32 %v615_v23, %v615_v23  ;;  %v618_v28 = vsub.f32 1.0, %v615_v23  ;;  %vm638_vm3 = vcmp.eq.f32.partialorder %v1887_v62, 5.0  ;;  %vm639_vm4 = vcmp.eq.f32.partialorder %v1887_v62, 6.0 }
 0x141   :  { %vm633_vm5 = vcmp.eq.f32.partialorder %v1887_v62, 0.0  ;;  %vm634_vm7 = vcmp.eq.f32.partialorder %v1887_v62, 1.0 }
 0x142   :  { %v617_v29 = vmul.f32 %v616_v27, %v615_v23  ;;  %v620_v30 = vadd.f32 %v616_v27, %v615_v23  ;;  %v630_v31 = vmul.f32 %v618_v28, %v618_v28  ;;  %v626_v32 = vmul.f32 6.0, %v616_v27  ;;  %v750_v23 = vld [vmem:[%s2010_s2 + $0x88] sm:$0xff] }
 0x143   :  { %1117 = vmatprep.subr.mxu1 %v750_v23 }
 0x144   :  { %v619_v33 = vmul.f32 0.16666667, %v617_v29  ;;  %v621_v34 = vsub.f32 %v620_v30, %v617_v29  ;;  %v625_v35 = vmul.f32 3.0, %v617_v29  ;;  %v631_v36 = vmul.f32 %v630_v31, %v618_v28  ;;  %v734_v31 = vld [vmem:[%s2010_s2 + $0x8] sm:$0xff] }
 0x145   :  { %1118 = vmatpush3.msra.mxu1 %v734_v31 }
 0x146   :  { %v622_v37 = vmul.f32 3.0, %v621_v34  ;;  %v627_v38 = vsub.f32 %v625_v35, %v626_v32  ;;  %v1895_v39 = vmul.f32 0.16666667, %v631_v36  ;;  %v693_v42 = vsel %vm640_vm12, %v619_v33, 0.0  ;;  %v749_v32 = vld [vmem:[%s2010_s2 + $0x80] sm:$0xff] }
 0x147   :  { %v658_v43 = vsel %vm635_vm0, %v619_v33, 0.0  ;;  %v686_v44 = vsel %vm639_vm4, %v619_v33, 0.0  ;;  %v644_v7 = vsel %vm633_vm5, %v619_v33, 0.0  ;;  %v651_v45 = vsel %vm634_vm7, %v619_v33, 0.0  ;;  %1119 = vmatprep.subr.mxu1 %v749_v32 }
 0x148   :  { %v623_v40 = vadd.f32 1.0, %v622_v37  ;;  %v628_v41 = vadd.f32 4.0, %v627_v38  ;;  %v698_v49 = vsel %vm643_vm15, %v1895_v39, 0.0  ;;  %v663_v50 = vsel %vm638_vm3, %v1895_v39, 0.0 }
 0x149   :  { %v691_v51 = vsel %vm642_vm14, %v1895_v39, 0.0  ;;  %v649_v52 = vsel %vm636_vm1, %v1895_v39, 0.0  ;;  %v672_v53 = vsel %vm637_vm2, %v619_v33, 0.0  ;;  %v665_v54 = vsel %vm636_vm1, %v619_v33, 0.0 }
 0x14a   :  { %v624_v46 = vmul.f32 0.16666667, %v623_v40  ;;  %v629_v47 = vmul.f32 0.16666667, %v628_v41  ;;  %v679_v58 = vsel %vm638_vm3, %v619_v33, 0.0  ;;  %v733_v33 = vld [vmem:[%s2010_s2] sm:$0xff] }
 0x14b   :  { %v670_v37 = vsel %vm639_vm4, %v1895_v39, 0.0  ;;  %v677_v40 = vsel %vm640_vm12, %v1895_v39, 0.0  ;;  %1120 = vmatpush3.msra.mxu1 %v733_v33  ;;  %s1229_s2 = smov 32  }
 0x14c   :  { %v694_v55 = vsel %vm641_vm13, %v624_v46, 0.0  ;;  %v696_v56 = vsel %vm642_vm14, %v629_v47, 0.0  ;;  %v659_v57 = vsel %vm636_vm1, %v624_v46, 0.0  ;;  %v666_v61 = vsel %vm637_vm2, %v624_v46, 0.0 }
 0x14d   :  { %v695_v59 = vadd.f32 %v694_v55, %v693_v42  ;;  %v660_v60 = vadd.f32 %v659_v57, %v658_v43  ;;  %v668_v63 = vsel %vm638_vm3, %v629_v47, 0.0  ;;  %v661_v1 = vsel %vm637_vm2, %v629_v47, 0.0 }
 0x14e   :  { %v687_v2 = vsel %vm640_vm12, %v624_v46, 0.0  ;;  %v689_v17 = vsel %vm641_vm13, %v629_v47, 0.0  ;;  %v645_v25 = vsel %vm634_vm7, %v624_v46, 0.0  ;;  %v647_v11 = vsel %vm635_vm0, %v629_v47, 0.0 }
 0x14f   :  { %v697_v4 = vadd.f32 %v696_v56, %v695_v59  ;;  %v662_v5 = vadd.f32 %v661_v1, %v660_v60  ;;  %v688_v6 = vadd.f32 %v687_v2, %v686_v44  ;;  %v646_v8 = vadd.f32 %v645_v25, %v644_v7 }
 0x150   :  { %v673_v12 = vsel %vm638_vm3, %v624_v46, 0.0  ;;  %v675_v48 = vsel %vm639_vm4, %v629_v47, 0.0  ;;  %v652_v26 = vsel %vm635_vm0, %v624_v46, 0.0  ;;  %v654_v22 = vsel %vm636_vm1, %v629_v47, 0.0 }
 0x151   :  { %v699_v13 = vadd.f32 %v698_v49, %v697_v4  ;;  %v664_v14 = vadd.f32 %v663_v50, %v662_v5  ;;  %v690_v15 = vadd.f32 %v689_v17, %v688_v6  ;;  %v648_v16 = vadd.f32 %v647_v11, %v646_v8 }
 0x152   :  { %v674_v19 = vadd.f32 %v673_v12, %v672_v53  ;;  %v653_v21 = vadd.f32 %v652_v26, %v651_v45  ;;  %v680_v24 = vsel %vm639_vm4, %v624_v46, 0.0  ;;  %v682_v30 = vsel %vm640_vm12, %v629_v47, 0.0 }
 0x153   :  { %1173 = vmatmul.mubr.msk.f32.vlgmr.msra.gmra.mxu0 %vm724_vm6, %v699_v13  ;;  %v692_v27 = vadd.f32 %v691_v51, %v690_v15  ;;  %v650_v28 = vadd.f32 %v649_v52, %v648_v16  ;;  %v681_v29 = vadd.f32 %v680_v24, %v679_v58  ;;  %v667_v36 = vadd.f32 %v666_v61, %v665_v54 }
 0x154   :  { %v676_v34 = vadd.f32 %v675_v48, %v674_v19  ;;  %v655_v35 = vadd.f32 %v654_v22, %v653_v21  ;;  %v656_v44 = vsel %vm637_vm2, %v1895_v39, 0.0  ;;  %v684_v7 = vsel %vm641_vm13, %v1895_v39, 0.0 }
 0x155   :  { %v1191_v38 = vpack.i.bf16 %v664_v14, %v692_v27  ;;  %v683_v41 = vadd.f32 %v682_v30, %v681_v29  ;;  %v669_v43 = vadd.f32 %v668_v63, %v667_v36  ;;  %v929_v51 = vmul.f32 -1.442695, %v1884_v20 }
 0x156   :  { %v678_v42 = vadd.f32 %v677_v40, %v676_v34  ;;  %v657_v46 = vadd.f32 %v656_v44, %v655_v35 }
 0x157   :  { %1192 = vrot.lane.b32.xlu1 %v1191_v38, %s1228_s10  ;;  %v685_v47 = vadd.f32 %v684_v7, %v683_v41  ;;  %v671_v49 = vadd.f32 %v670_v37, %v669_v43  ;;  %1200 = vpow2.f32 %v929_v51 }
 0x158   :  { %v1181_v45 = vpack.i.bf16 %v650_v28, %v678_v42 }
 0x159   :  { %v1186_v50 = vpack.i.bf16 %v657_v46, %v685_v47 }
 0x15a   :  { %1182 = vrot.lane.b32.xlu0 %v1181_v45, %s1229_s2 }
 0x15e   :  { %1187 = vrot.lane.b32.xlu0 %v1186_v50, %s1230_s11 }
 0x164   :  { %v1201_v52 = vpop.eup %1200 }
 0x165   :  { %v608_v53 = vadd.f32 1.0, %v1201_v52 }
 0x167   :  { %1202 = vrcp.f32 %v608_v53 }
 0x174   :  { %v1203_v55 = vpop.eup %1202 }
 0x175   :  { %v611_v57 = vmul.f32 %v1203_v55, %v1884_v20 }
 0x1c9   :  { %v1193_v39 = vpop.permute.xlu1 %1192 }
 0x1ca   :  { %v1195_v61 = vunpack.i.h.bf16 %v1193_v39  ;;  %v1194_v63 = vunpack.i.l.bf16 %v1193_v39 }
 0x1cc   :  { %v1183_v54 = vpop.permute.xlu0 %1182 }
 0x1cd   :  { %v1185_v56 = vunpack.i.h.bf16 %v1183_v54  ;;  %v1184_v62 = vunpack.i.l.bf16 %v1183_v54 }
 0x1cf   :  { %v725_v0 = vsel %vm724_vm6, %v611_v57, %v1185_v56  ;;  %v730_v1 = vsel %vm724_vm6, %v671_v49, %v1184_v62 }
 0x1d0   :  { %v1188_v58 = vpop.permute.xlu0 %1187 }
 0x1d1   :  { %v1190_v59 = vunpack.i.h.bf16 %v1188_v58  ;;  %v1189_v60 = vunpack.i.l.bf16 %v1188_v58 }
 0x1d3   :  { %v727_v2 = vsel %vm726_vm8, %v725_v0, %v1190_v59  ;;  %v731_v17 = vsel %vm726_vm8, %v730_v1, %v1189_v60 }
 0x1d4   :  { %v732_v25 = vsel %vm728_vm9, %v731_v17, %v1194_v63  ;;  %v729_v3 = vsel %vm728_vm9, %v727_v2, %v1195_v61 }
 0x1d5   :  { %836 = vmatprep.mubr.f32.mxu1 %v732_v25 }
 0x1d6   :  { %837 = vmatmul.mubr.f32.vlgmr.msra.gmra.mxu1 %v729_v3 }
 0x213   :  { %v908_v4 = vpop.f32.mrf.mxu0 }
 0x215   :  { %v1174_v5 = vpop.f32.mrf.mxu0 }
 0x296   :  { %v1121_v20 = vpop.f32.mrf.mxu1 }
 0x298   :  { %v1122_v6 = vpop.f32.mrf.mxu1 }
 0x299   :  { %v1123_v8 = vadd.f32 %v1122_v6, %v1121_v20 }
 0x29b   :  { %v909_v9 = vadd.f32 %v1123_v8, %v908_v4 }
 0x29d   :  { %912 = vst [vmem:[#allocation2] sm:$0xff] %v909_v9 }
 0x29e   :  { %1215 = shalt.err (!%p1212_p4)
}
 0x29f   :  { %922 = dma.vmem_to_hbm [thread:$0]  %s920_s13, 128, %s2011_s3, [#allocation3]  }
 0x2a0   :  { %1224 = dma.done.wait [#allocation3], 128  }
 0x2a1   :  { %1225 = vsyncadd [#allocation3], 4294967168 }
 0x2a2   :  { %926 = vsyncpa [#allocation3], 1 }

</bundles_post_ra>
